<compile_context>
chip_gen: v7x
topology: tpu7x:2x2x1
jax: 0.10.0
libtpu: 0.0.40
codegen_flags: <defaults>
</compile_context>

<pallas_src>
import jax
import jax.numpy as jnp
from jax.experimental import pallas as pl
from jax.experimental.pallas import tpu as pltpu


def _residual_conv1x1_kernel(x_ref, wt_ref, b_ref, o_ref):
    """One (1, C, tS) spatial tile: out = W^T x + b + x (channel mix + residual).

    x_ref  : (1, C, tS)  input tile  (lane axis = spatial positions)
    wt_ref : (C, C)      transposed weights, wt[d, c] = w[c, d]
    b_ref  : (C, 1)      bias column
    o_ref  : (1, C, tS)  output tile
    """
    x = x_ref[0].astype(jnp.float32)          # (C, tS)
    wt = wt_ref[...].astype(jnp.float32)      # (C_out, C_in)
    b = b_ref[...].astype(jnp.float32)        # (C, 1)

    # Residual + bias, then C broadcast-FMAs on the VPU (MXU skipped on
    # purpose: an 8-wide contraction would waste the 128/256-wide MXU).
    acc = x + b                               # (C, tS)
    n_in = x.shape[0]
    for c in range(n_in):                     # static unroll; C is tiny (=8)
        # acc[d, s] += w[c, d] * x[c, s]
        acc = acc + wt[:, c:c + 1] * x[c:c + 1, :]

    o_ref[0, :, :] = acc.astype(o_ref.dtype)


def residual_conv1x1(x_nchw, w, b, *, max_tile_s=4096, alias_input=False):
    """out = Conv2d(C, C, kernel_size=1)(x) + x, with x in NCHW layout.

    x_nchw : (N, C, H, W)
    w      : (C_in, C_out)   1x1-conv weights
    b      : (C_out,)        bias
    """
    N, C, H, W = x_nchw.shape
    S = H * W

    # Free views / tiny host-side prep (no big HBM copies).
    x3 = x_nchw.reshape(N, C, S)            # HW already trailing & contiguous
    wt = jnp.transpose(w)                   # (C_out, C_in), 8x8 -> negligible
    b2 = b.reshape(C, 1)

    # Spatial tile: lane-dense, multiple of 128 (or the full extent if small).
    if S <= max_tile_s:
        t_s = S                             # full dim -> always legal
    else:
        t_s = max_tile_s                    # multiple of 128
    grid = (N, pl.cdiv(S, t_s))             # ragged tail masked by Pallas

    itemsize = jnp.dtype(x3.dtype).itemsize
    cost = pl.CostEstimate(
        flops=int(2 * N * C * C * S + 2 * N * C * S),
        transcendentals=0,
        bytes_accessed=int(2 * N * C * S * itemsize + (C * C + C) * 4),
    )
    io_alias = {0: 0} if alias_input else {}

    out3 = pl.pallas_call(
        _residual_conv1x1_kernel,
        out_shape=jax.ShapeDtypeStruct((N, C, S), x3.dtype),
        grid_spec=pltpu.PrefetchScalarGridSpec(
            num_scalar_prefetch=0,
            grid=grid,
            in_specs=[
                pl.BlockSpec((1, C, t_s), lambda n, s: (n, 0, s)),  # x tile
                pl.BlockSpec((C, C), lambda n, s: (0, 0)),          # weights
                pl.BlockSpec((C, 1), lambda n, s: (0, 0)),          # bias
            ],
            out_specs=pl.BlockSpec((1, C, t_s), lambda n, s: (n, 0, s)),
        ),
        compiler_params=pltpu.CompilerParams(
            dimension_semantics=("parallel", "parallel")),
        input_output_aliases=io_alias,
        cost_estimate=cost,
    )(x3, wt, b2)

    return out3.reshape(N, C, H, W)


if __name__ == "__main__":
    key = jax.random.PRNGKey(0)
    kx, kw, kb = jax.random.split(key, 3)

    N, C, H, W = 2, 8, 16, 16
    x = jax.random.normal(kx, (N, C, H, W), dtype=jnp.float32)
    # deterministic parameter init for fn = Conv2d(C, C, 1)
    w = jax.random.normal(kw, (C, C), dtype=jnp.float32) * 0.1   # (in, out)
    b = jax.random.normal(kb, (C,), dtype=jnp.float32) * 0.1

    out = residual_conv1x1(x, w, b)
    out = jax.block_until_ready(out)

    # pure-JAX reference: fn(x) + x with fn = 1x1 conv over channels
    ref = jnp.einsum("nchw,cd->ndhw", x, w) + b[None, :, None, None] + x
    assert out.shape == x.shape and out.dtype == x.dtype
    assert jnp.allclose(out, ref, atol=1e-5, rtol=1e-5)

    print("KERNEL_OK")
</pallas_src>

<mosaic_0001>
module attributes {stable_mosaic.version = 11 : i64} {
  func.func @_residual_conv1x1_kernel(%arg0: i32, %arg1: i32, %arg2: memref<1x8x256xf32, #tpu.memory_space<vmem>>, %arg3: memref<8x8xf32, #tpu.memory_space<vmem>>, %arg4: memref<8x1xf32, #tpu.memory_space<vmem>>, %arg5: memref<1x8x256xf32, #tpu.memory_space<vmem>>) attributes {dimension_semantics = [#tpu.dimension_semantics<parallel>, #tpu.dimension_semantics<parallel>], iteration_bounds = array<i64: 2, 1>, scalar_prefetch = 0 : i64, scratch_operands = 0 : i64, tpu.core_type = #tpu.core_type<tc>, window_params = [{transform_indices = @transform_0, window_bounds = array<i64: 1, 8, 256>}, {pipeline_mode = #tpu.pipeline_mode<synchronous>, transform_indices = @transform_1, window_bounds = array<i64: 8, 8>}, {pipeline_mode = #tpu.pipeline_mode<synchronous>, transform_indices = @transform_2, window_bounds = array<i64: 8, 1>}, {transform_indices = @transform_3, window_bounds = array<i64: 1, 8, 256>}]} {
    %c0 = arith.constant 0 : index
    %c0_0 = arith.constant 0 : index
    %c0_1 = arith.constant 0 : index
    %0 = vector.load %arg2[%c0, %c0_0, %c0_1] : memref<1x8x256xf32, #tpu.memory_space<vmem>>, vector<1x8x256xf32>
    %1 = vector.shape_cast %0 : vector<1x8x256xf32> to vector<8x256xf32>
    %c0_2 = arith.constant 0 : index
    %c0_3 = arith.constant 0 : index
    %2 = vector.load %arg3[%c0_2, %c0_3] : memref<8x8xf32, #tpu.memory_space<vmem>>, vector<8x8xf32>
    %c0_4 = arith.constant 0 : index
    %c0_5 = arith.constant 0 : index
    %3 = vector.load %arg4[%c0_4, %c0_5] : memref<8x1xf32, #tpu.memory_space<vmem>>, vector<8x1xf32>
    %4 = vector.broadcast %3 : vector<8x1xf32> to vector<8x256xf32>
    %5 = arith.addf %1, %4 : vector<8x256xf32>
    %6 = vector.extract_strided_slice %2 {offsets = [0, 0], sizes = [8, 1], strides = [1, 1]} : vector<8x8xf32> to vector<8x1xf32>
    %7 = vector.extract_strided_slice %1 {offsets = [0, 0], sizes = [1, 256], strides = [1, 1]} : vector<8x256xf32> to vector<1x256xf32>
    %8 = vector.broadcast %6 : vector<8x1xf32> to vector<8x256xf32>
    %9 = vector.broadcast %7 : vector<1x256xf32> to vector<8x256xf32>
    %10 = arith.mulf %8, %9 : vector<8x256xf32>
    %11 = arith.addf %5, %10 : vector<8x256xf32>
    %12 = vector.extract_strided_slice %2 {offsets = [0, 1], sizes = [8, 1], strides = [1, 1]} : vector<8x8xf32> to vector<8x1xf32>
    %13 = vector.extract_strided_slice %1 {offsets = [1, 0], sizes = [1, 256], strides = [1, 1]} : vector<8x256xf32> to vector<1x256xf32>
    %14 = vector.broadcast %12 : vector<8x1xf32> to vector<8x256xf32>
    %15 = vector.broadcast %13 : vector<1x256xf32> to vector<8x256xf32>
    %16 = arith.mulf %14, %15 : vector<8x256xf32>
    %17 = arith.addf %11, %16 : vector<8x256xf32>
    %18 = vector.extract_strided_slice %2 {offsets = [0, 2], sizes = [8, 1], strides = [1, 1]} : vector<8x8xf32> to vector<8x1xf32>
    %19 = vector.extract_strided_slice %1 {offsets = [2, 0], sizes = [1, 256], strides = [1, 1]} : vector<8x256xf32> to vector<1x256xf32>
    %20 = vector.broadcast %18 : vector<8x1xf32> to vector<8x256xf32>
    %21 = vector.broadcast %19 : vector<1x256xf32> to vector<8x256xf32>
    %22 = arith.mulf %20, %21 : vector<8x256xf32>
    %23 = arith.addf %17, %22 : vector<8x256xf32>
    %24 = vector.extract_strided_slice %2 {offsets = [0, 3], sizes = [8, 1], strides = [1, 1]} : vector<8x8xf32> to vector<8x1xf32>
    %25 = vector.extract_strided_slice %1 {offsets = [3, 0], sizes = [1, 256], strides = [1, 1]} : vector<8x256xf32> to vector<1x256xf32>
    %26 = vector.broadcast %24 : vector<8x1xf32> to vector<8x256xf32>
    %27 = vector.broadcast %25 : vector<1x256xf32> to vector<8x256xf32>
    %28 = arith.mulf %26, %27 : vector<8x256xf32>
    %29 = arith.addf %23, %28 : vector<8x256xf32>
    %30 = vector.extract_strided_slice %2 {offsets = [0, 4], sizes = [8, 1], strides = [1, 1]} : vector<8x8xf32> to vector<8x1xf32>
    %31 = vector.extract_strided_slice %1 {offsets = [4, 0], sizes = [1, 256], strides = [1, 1]} : vector<8x256xf32> to vector<1x256xf32>
    %32 = vector.broadcast %30 : vector<8x1xf32> to vector<8x256xf32>
    %33 = vector.broadcast %31 : vector<1x256xf32> to vector<8x256xf32>
    %34 = arith.mulf %32, %33 : vector<8x256xf32>
    %35 = arith.addf %29, %34 : vector<8x256xf32>
    %36 = vector.extract_strided_slice %2 {offsets = [0, 5], sizes = [8, 1], strides = [1, 1]} : vector<8x8xf32> to vector<8x1xf32>
    %37 = vector.extract_strided_slice %1 {offsets = [5, 0], sizes = [1, 256], strides = [1, 1]} : vector<8x256xf32> to vector<1x256xf32>
    %38 = vector.broadcast %36 : vector<8x1xf32> to vector<8x256xf32>
    %39 = vector.broadcast %37 : vector<1x256xf32> to vector<8x256xf32>
    %40 = arith.mulf %38, %39 : vector<8x256xf32>
    %41 = arith.addf %35, %40 : vector<8x256xf32>
    %42 = vector.extract_strided_slice %2 {offsets = [0, 6], sizes = [8, 1], strides = [1, 1]} : vector<8x8xf32> to vector<8x1xf32>
    %43 = vector.extract_strided_slice %1 {offsets = [6, 0], sizes = [1, 256], strides = [1, 1]} : vector<8x256xf32> to vector<1x256xf32>
    %44 = vector.broadcast %42 : vector<8x1xf32> to vector<8x256xf32>
    %45 = vector.broadcast %43 : vector<1x256xf32> to vector<8x256xf32>
    %46 = arith.mulf %44, %45 : vector<8x256xf32>
    %47 = arith.addf %41, %46 : vector<8x256xf32>
    %48 = vector.extract_strided_slice %2 {offsets = [0, 7], sizes = [8, 1], strides = [1, 1]} : vector<8x8xf32> to vector<8x1xf32>
    %49 = vector.extract_strided_slice %1 {offsets = [7, 0], sizes = [1, 256], strides = [1, 1]} : vector<8x256xf32> to vector<1x256xf32>
    %50 = vector.broadcast %48 : vector<8x1xf32> to vector<8x256xf32>
    %51 = vector.broadcast %49 : vector<1x256xf32> to vector<8x256xf32>
    %52 = arith.mulf %50, %51 : vector<8x256xf32>
    %53 = arith.addf %47, %52 : vector<8x256xf32>
    %c0_6 = arith.constant 0 : index
    %c0_7 = arith.constant 0 : index
    %c0_8 = arith.constant 0 : index
    %54 = vector.load %arg5[%c0_6, %c0_7, %c0_8] : memref<1x8x256xf32, #tpu.memory_space<vmem>>, vector<1x8x256xf32>
    %55 = vector.shape_cast %54 : vector<1x8x256xf32> to vector<8x256xf32>
    %56 = vector.shape_cast %53 : vector<8x256xf32> to vector<1x8x256xf32>
    tpu.vector_store %arg5[%c0_6, %c0_7, %c0_8], %56 {strides = array<i32>} : memref<1x8x256xf32, #tpu.memory_space<vmem>>, vector<1x8x256xf32>,
    return
  }
  func.func @transform_0(%arg0: i32, %arg1: i32) -> (i32, i32, i32) {
    %c0_i32 = arith.constant 0 : i32
    %c0_i32_0 = arith.constant 0 : i32
    return %arg0, %c0_i32, %arg1 : i32, i32, i32
  }
  func.func @transform_1(%arg0: i32, %arg1: i32) -> (i32, i32) {
    %c0_i32 = arith.constant 0 : i32
    %c0_i32_0 = arith.constant 0 : i32
    %c0_i32_1 = arith.constant 0 : i32
    return %c0_i32, %c0_i32_0 : i32, i32
  }
  func.func @transform_2(%arg0: i32, %arg1: i32) -> (i32, i32) {
    %c0_i32 = arith.constant 0 : i32
    %c0_i32_0 = arith.constant 0 : i32
    %c0_i32_1 = arith.constant 0 : i32
    return %c0_i32, %c0_i32_0 : i32, i32
  }
  func.func @transform_3(%arg0: i32, %arg1: i32) -> (i32, i32, i32) {
    %c0_i32 = arith.constant 0 : i32
    %c0_i32_0 = arith.constant 0 : i32
    return %arg0, %c0_i32, %arg1 : i32, i32, i32
  }
}

</mosaic_0001>

<bundles_post_ra>
// kernel: tpu_custom_call.1
= control target key start
LH: loop header
LB: loop body
LE: loop exit
PB: predicated region body
PF: predicated region fallthrough
CT: control target
= control target key end

     0   :  { %8 = vsyncpa [#allocation3], 0  ;;  %s876_s0 = inlined_call_operand.hbm [shape: f32[2,8,256], index: 0, kind: input, shape index: {}]   ;;  %s877_s1 = inlined_call_operand.vmem [shape: f32[8,8], index: 1, kind: input, shape index: {}]   ;;  %s878_s2 = inlined_call_operand.vmem [shape: f32[8,1], index: 2, kind: input, shape index: {}]   ;;  %s879_s3 = inlined_call_operand.hbm [shape: f32[2,8,256], index: 3, kind: output, shape index: {}]  }
   0x1   :  { %10 = vsyncpa [#allocation3 + $0x1], 0 }
   0x2   :  { %11 = vsyncpa [#allocation4], 0 }
   0x3   :  { %13 = vsyncpa [#allocation4 + $0x1], 0  ;;  %s690_s12 = smov 0   ;;  %s692_s13 = smov 0  }
   0x4   :  { %s694_s14 = smov 0   ;;  %s696_s15 = smov 0  }
   0x5   :  { %s698_s16 = smov 0   ;;  %s700_s17 = smov 0  }
   0x6 LB: > { %s450_s18 = sadd.s32 4294967295, %s658_s17   ;;  %s451_s19 = sadd.s32 4294967294, %s658_s17   ;;  %s658_s17 = sphi %s700_s17, %s19_s17   ;;  %s654_s16 = sphi %s698_s16, %s895_s16   ;;  %s650_s15 = sphi %s696_s15, %s894_s15   ;;  %s646_s14 = sphi %s694_s14, %s893_s14   ;;  %s642_s13 = sphi %s692_s13, %s892_s13   ;;  %s638_s12 = sphi %s690_s12, %s891_s12  }
   0x7   : > { %s31_s20 = sadd.s32 1, %s654_s16  ;;  %s40_s21 = sadd.s32 1, %s646_s14 }
   0x8   : > { %p33_p0 = scmp.ge.s32.totalorder %s31_s20, 2  ;;  %p47_p1 = scmp.ne.s32.totalorder %s646_s14, %s642_s13 }
   0x9   : > { %p48_p2 = scmp.eq.s32.totalorder %s658_s17, 0  ;;  %p53_p3 = scmp.ne.s32.totalorder %s642_s13, %s638_s12 }
   0xa   : > { %s897_s20 = smov (%p33_p0, %s31_s20), 0  ;;  %p54_p5 = scmp.eq.s32.totalorder %s450_s18, 0 }
   0xb   : > { %p731_p4 = por %p48_p2, %p47_p1  ;;  %s35_s23 = ssub.s32 %s654_s16, %s897_s20 }
   0xc   : > { %p121_p6 = scmp.eq.s32.totalorder %s450_s18, 1  ;;  %p38_p7 = scmp.eq.s32.totalorder %s35_s23, 0 }
   0xd   : > { %p737_p8 = por %p54_p5, %p53_p3  ;;  %p127_p10 = scmp.eq.s32.totalorder %s451_s19, 1 }
   0xe   : > { %p741_p9 = por %p121_p6, %p47_p1  ;;  %p479_p13 = scmp.lt.s32.totalorder %s658_s17, 2 }
   0xf   : > { %s746_s26 = scalar_select %p38_p7, %s646_s14, %s40_s21  }
  0x10   : > { %s883_s25 = scalar_select %p741_p9, 1, 0 }
  0x11   : > { %p748_p11 = por %p127_p10, %p53_p3  ;;  %s153_s28 = sand.u32 1, %s646_s14  }
  0x12   : > { %s454_s29 = sshll.u32 %s153_s28, 4  ;;  %s465_s30 = sshll.u32 %s654_s16, 8 }
  0x13   : > { %s884_s27 = scalar_select %p748_p11, 1, 0 }
  0x14   : > { %s759_s6 = scalar_lea.hbm %s876_s0, %s465_s30  ;;  %s157_s7 = scalar_lea.vmem [#allocation2], %s454_s29 }
  0x15   : > { %s167_s8 = sshll.u32 %s157_s7, 4  ;;  %p765_p0 = pnand %p479_p13, %p731_p4  ;;  %s761_s8 = int_to_ptr.vmem [resolvable:$true] %s167_s8 }
  0x16   : > { %s154_s10 = scalar_lea.sflag [#allocation3], %s153_s28  ;;  %s546_s11 = scalar_lea.hbm %s759_s6, 256 }
  0x17   : > { %p547_p3 = scmp.ne.s32.totalorder %s759_s6, %s546_s11  ;;  %p548_p5 = pneg %p765_p0 }
  0x18   : > { %s551_s21 = scalar_lea.hbm %s876_s0, 512  ;;  %p552_p4 = scmp.lt.u32.totalorder %s759_s6, %s876_s0 }
  0x19   : > { %p549_p6 = pnand %p548_p5, %p547_p3  ;;  %p553_p10 = scmp.lt.u32.totalorder %s551_s21, %s546_s11 }
  0x1a   : > { %p555_p12 = scmp.lt.u32.totalorder %s546_s11, %s759_s6 }
  0x1b   : > { %p550_p7 = pneg %p549_p6  ;;  %p554_p13 = por %p553_p10, %p552_p4 }
  0x1d   : > { %p556_p1 = por %p555_p12, %p554_p13 }
  0x1f   : > { %p557_p2 = pnand %p556_p1, %p550_p7 }
  0x21   : > { %560 = shalt.err (!%p557_p2)
}
  0x22   : > { %s561_s28 = scalar_lea.vmem %s761_s8, 256  ;;  %s660_s29 = smov [#allocation2]  }
  0x23   : > { %p562_p3 = scmp.ne.s32.totalorder %s761_s8, %s561_s28  ;;  %s566_s30 = sshll.u32 %s660_s29, 4  ;;  %s567_s30 = int_to_ptr.vmem [resolvable:$false] %s566_s30 }
  0x24   : > { %s568_s4 = scalar_lea.vmem %s567_s30, 512  ;;  %p569_p9 = scmp.lt.s32.totalorder %s761_s8, %s567_s30 }
  0x25   : > { %p564_p6 = pnand %p562_p3, %p548_p5  ;;  %p570_p4 = scmp.lt.s32.totalorder %s568_s4, %s561_s28 }
  0x27   : > { %p565_p11 = pneg %p564_p6  ;;  %p571_p10 = por %p570_p4, %p569_p9 }
  0x29   : > { %p572_p12 = pnand %p571_p10, %p565_p11 }
  0x2b   : > { %575 = shalt.err (!%p572_p12)
}
  0x2c   : > { %474 = dma.hbm_to_vmem [thread:$0]  (!%p765_p0), %s759_s6, 256, %s761_s8, %s154_s10  }
  0x2d   : > { %p886_p1 = scmp.lt.s32.totalorder %s658_s17, 3  ;;  %p887_p2 = scmp.ge.s32.totalorder %s658_s17, 1 }
  0x2f   : > { %p173_p5 = pnand %p887_p2, %p886_p1 }
  0x30   : > { %s801_s5 = sand.u32 (!%p173_p5), 1, %s642_s13  }
  0x31   : > { %176 = sbr.rel (%p173_p5) target bundleno = 225 (0xe1), region = 32  ;;  %s458_s7 = sshll.u32 (!%p173_p5), %s801_s5, 4 }
  0x32   : > { %s179_s11 = scalar_lea.sflag (!%p173_p5), [#allocation3], %s801_s5  ;;  %s807_s9 = scalar_lea.vmem (!%p173_p5), [#allocation2], %s458_s7 }
  0x38   : > { %629 = dma.done.wait (%p737_p8), %s179_s11, 256  }
  0x39   : > { %631 = vsyncadd (%p737_p8), %s179_s11, 4294967040  ;;  %v661_v0 = vmov 1   ;;  %v662_v1 = vmov 0   ;;  %v210_v2 = vld [vmem:[%s878_s2] sm:$0xff]  ;;  %v663_v4 = vmov 2   ;;  %v664_v5 = vmov 3  }
  0x3a   : > { %538 = vset.pattern.permute.xlu1 %v661_v0  ;;  %537 = vset.pattern.permute.xlu0 %v662_v1  ;;  %v209_v3 = vld [vmem:[%s877_s1] sm:$0xff]  ;;  %v665_v6 = vmov 4   ;;  %v666_v7 = vmov 6   ;;  %v667_v8 = vmov 5   ;;  %v668_v9 = vmov 7   ;;  %v208_v16 = vld [vmem:[%s807_s9 + $0x8] sm:$0xff] }
  0x3b   : > { %213 = vperm.xlu0 %537, %v210_v2   ;;  %236 = vperm.xlu1 %538, %v209_v3   ;;  %v223_v10 = vlaneseq  ;;  %v207_v15 = vld [vmem:[%s807_s9] sm:$0xff]  ;;  %s466_s24 = sshll.u32 %s650_s15, 8  ;;  %s204_s19 = scalar_lea.vmem [#allocation5], %s458_s7 }
  0x3c   : > { %s366_s21 = sshll.u32 %s204_s19, 4  ;;  %s827_s28 = scalar_lea.hbm %s879_s3, %s466_s24  ;;  %s829_s21 = int_to_ptr.vmem [resolvable:$true] %s366_s21 }
  0x3d   : > { %v224_v11 = vshrl.u32 %v223_v10, 7  ;;  %s350_s15 = scalar_lea.sflag [#allocation4], %s801_s5  ;;  %s576_s29 = scalar_lea.vmem %s829_s21, 256 }
  0x3e   : > { %p577_p8 = scmp.ne.s32.totalorder %s829_s21, %s576_s29  ;;  %p888_p9 = scmp.ne.s32.totalorder %s883_s25, 0 }
  0x3f   : > { %539 = vset.pattern.permute.xlu1 %v663_v4  ;;  %220 = vperm.xlu0 %537, %v209_v3   ;;  %v225_v12 = vsub.s32 0, %v224_v11  ;;  %v241_v13 = vsub.s32 1, %v224_v11  ;;  %v257_v18 = vsub.s32 2, %v224_v11  ;;  %v273_v21 = vsub.s32 3, %v224_v11  ;;  %s669_s30 = smov [#allocation5]  }
  0x40   : > { %252 = vperm.xlu1 %539, %v209_v3   ;;  %v289_v27 = vsub.s32 4, %v224_v11  ;;  %v305_v35 = vsub.s32 5, %v224_v11  ;;  %v321_v42 = vsub.s32 6, %v224_v11  ;;  %v337_v57 = vsub.s32 7, %v224_v11  ;;  %p578_p11 = pnand %p577_p8, %p888_p9  ;;  %s580_s4 = sshll.u32 %s669_s30, 4  ;;  %s581_s4 = int_to_ptr.vmem [resolvable:$false] %s580_s4 }
  0x41   : > { %v226_v19 = vrot.slane %v207_v15, %v225_v12  ;;  %v230_v20 = vrot.slane %v208_v16, %v225_v12  ;;  %v242_v22 = vrot.slane %v207_v15, %v241_v13  ;;  %v246_v23 = vrot.slane %v208_v16, %v241_v13  ;;  %s582_s7 = scalar_lea.vmem %s581_s4, 512  ;;  %p583_p7 = scmp.lt.s32.totalorder %s829_s21, %s581_s4 }
  0x42   : > { %v258_v25 = vrot.slane %v207_v15, %v257_v18  ;;  %v262_v26 = vrot.slane %v208_v16, %v257_v18  ;;  %v274_v33 = vrot.slane %v207_v15, %v273_v21  ;;  %v278_v34 = vrot.slane %v208_v16, %v273_v21  ;;  %p579_p0 = pneg %p578_p11  ;;  %p584_p13 = scmp.lt.s32.totalorder %s582_s7, %s576_s29 }
  0x43   : > { %540 = vset.pattern.permute.xlu0 %v664_v5  ;;  %v290_v40 = vrot.slane %v207_v15, %v289_v27  ;;  %v294_v41 = vrot.slane %v208_v16, %v289_v27  ;;  %v306_v53 = vrot.slane %v207_v15, %v305_v35  ;;  %v310_v54 = vrot.slane %v208_v16, %v305_v35 }
  0x44   : > { %541 = vset.pattern.permute.xlu1 %v665_v6  ;;  %268 = vperm.xlu0 %540, %v209_v3   ;;  %v322_v55 = vrot.slane %v207_v15, %v321_v42  ;;  %v326_v56 = vrot.slane %v208_v16, %v321_v42  ;;  %v338_v6 = vrot.slane %v207_v15, %v337_v57  ;;  %p585_p3 = por %p584_p13, %p583_p7 }
  0x45   : > { %284 = vperm.xlu1 %541, %v209_v3  }
  0x46   : > { %p586_p6 = pnand %p585_p3, %p579_p0 }
  0x48   : > { %543 = vset.pattern.permute.xlu0 %v666_v7  ;;  %v342_v7 = vrot.slane %v208_v16, %v337_v57 }
  0x49   : > { %542 = vset.pattern.permute.xlu1 %v667_v8  ;;  %316 = vperm.xlu0 %543, %v209_v3  }
  0x4a   : > { %300 = vperm.xlu1 %542, %v209_v3  }
  0x4d   : > { %545 = vset.pattern.permute.xlu0 %v668_v9 }
  0x4e   : > { %544 = vset.pattern.permute.xlu1 %v668_v9 }
  0x4f   : > { %332 = vperm.xlu1 %544, %v209_v3  }
  0xba   : > { %v214_v14 = vpop.permute.xlu0 %213  ;;  %v237_v17 = vpop.permute.xlu1 %236 }
  0xbb   : > { %v216_v28 = vadd.f32 %v214_v14, %v207_v15  ;;  %v217_v29 = vadd.f32 %v214_v14, %v208_v16  ;;  %v247_v36 = vmul.f32 %v242_v22, %v237_v17  ;;  %v248_v37 = vmul.f32 %v246_v23, %v237_v17 }
  0xbe   : > { %v221_v24 = vpop.permute.xlu0 %220 }
  0xbf   : > { %v231_v30 = vmul.f32 %v226_v19, %v221_v24  ;;  %v232_v31 = vmul.f32 %v230_v20, %v221_v24  ;;  %v253_v32 = vpop.permute.xlu1 %252 }
  0xc0   : > { %v263_v45 = vmul.f32 %v258_v25, %v253_v32  ;;  %v264_v46 = vmul.f32 %v262_v26, %v253_v32 }
  0xc1   : > { %v233_v38 = vadd.f32 %v231_v30, %v216_v28  ;;  %v234_v39 = vadd.f32 %v232_v31, %v217_v29 }
  0xc3   : > { %v249_v43 = vadd.f32 %v247_v36, %v233_v38  ;;  %v250_v44 = vadd.f32 %v248_v37, %v234_v39  ;;  %v269_v47 = vpop.permute.xlu0 %268 }
  0xc4   : > { %v285_v48 = vpop.permute.xlu1 %284  ;;  %v279_v49 = vmul.f32 %v274_v33, %v269_v47  ;;  %v280_v50 = vmul.f32 %v278_v34, %v269_v47 }
  0xc5   : > { %v265_v51 = vadd.f32 %v263_v45, %v249_v43  ;;  %v266_v52 = vadd.f32 %v264_v46, %v250_v44  ;;  %v295_v58 = vmul.f32 %v290_v40, %v285_v48  ;;  %v296_v59 = vmul.f32 %v294_v41, %v285_v48 }
  0xc7   : > { %v281_v60 = vadd.f32 %v279_v49, %v265_v51  ;;  %v282_v61 = vadd.f32 %v280_v50, %v266_v52 }
  0xc8   : > { %v317_v62 = vpop.permute.xlu0 %316 }
  0xc9   : > { %v301_v63 = vpop.permute.xlu1 %300  ;;  %v297_v0 = vadd.f32 %v295_v58, %v281_v60  ;;  %v298_v1 = vadd.f32 %v296_v59, %v282_v61  ;;  %v327_v4 = vmul.f32 %v322_v55, %v317_v62  ;;  %v328_v5 = vmul.f32 %v326_v56, %v317_v62 }
  0xca   : > { %v311_v2 = vmul.f32 %v306_v53, %v301_v63  ;;  %v312_v3 = vmul.f32 %v310_v54, %v301_v63 }
  0xcc   : > { %v313_v8 = vadd.f32 %v311_v2, %v297_v0  ;;  %v314_v9 = vadd.f32 %v312_v3, %v298_v1 }
  0xce   : > { %v329_v10 = vadd.f32 %v327_v4, %v313_v8  ;;  %v330_v11 = vadd.f32 %v328_v5, %v314_v9  ;;  %v333_v12 = vpop.permute.xlu1 %332 }
  0xcf   : > { %v343_v13 = vmul.f32 %v338_v6, %v333_v12  ;;  %v344_v14 = vmul.f32 %v342_v7, %v333_v12 }
  0xd1   : > { %v345_v17 = vadd.f32 %v343_v13, %v329_v10  ;;  %v346_v18 = vadd.f32 %v344_v14, %v330_v11 }
  0xd3   : > { %347 = vst [vmem:[%s204_s19] sm:$0xff] %v345_v17  ;;  %348 = vst [vmem:[%s204_s19 + $0x8] sm:$0xff] %v346_v18 }
  0xd4   : > { %589 = shalt.err (!%p586_p6)
}
  0xd5   : > { %s590_s5 = scalar_lea.hbm %s827_s28, 256  ;;  %s594_s6 = scalar_lea.hbm %s879_s3, 512 }
  0xd6   : > { %p591_p4 = scmp.ne.s32.totalorder %s827_s28, %s590_s5  ;;  %p595_p1 = scmp.lt.u32.totalorder %s827_s28, %s879_s3 }
  0xd7   : > { %p596_p2 = scmp.lt.u32.totalorder %s594_s6, %s590_s5  ;;  %p598_p8 = scmp.lt.u32.totalorder %s590_s5, %s827_s28 }
  0xd8   : > { %p592_p10 = pnand %p591_p4, %p888_p9 }
  0xd9   : > { %p597_p5 = por %p596_p2, %p595_p1 }
  0xda   : > { %p593_p12 = pneg %p592_p10 }
  0xdb   : > { %p599_p11 = por %p598_p8, %p597_p5 }
  0xdd   : > { %p600_p0 = pnand %p599_p11, %p593_p12 }
  0xdf   : > { %603 = shalt.err (!%p600_p0)
}
  0xe0   : > { %469 = dma.vmem_to_hbm [thread:$0]  (%p888_p9), %s829_s21, 256, %s827_s28, %s350_s15  }
  0xe1 PF: > { %s378_s18 = sand.u32 1, %s638_s12   ;;  %p889_p7 = scmp.ne.s32.totalorder %s884_s27, 0 }
  0xe2   : > { %p890_p13 = scmp.ge.s32.totalorder %s658_s17, 2  ;;  %s379_s24 = scalar_lea.sflag [#allocation4], %s378_s18 }
  0xe4   : > { %p476_p3 = pnand %p890_p13, %p889_p7 }
  0xe6   : > { %633 = dma.done.wait (!%p476_p3), %s379_s24, 256  }
  0xe7   : > { %635 = vsyncadd (!%p476_p3), %s379_s24, 4294967040  ;;  %s19_s17 = sadd.s32 1, %s658_s17   ;;  %s891_s12 = smov %s642_s13 }
  0xe8   : > { %p16_p6 = scmp.ge.s32.totalorder %s19_s17, 4   ;;  %s892_s13 = smov %s646_s14 }
  0xe9   : > { %s893_s14 = smov %s746_s26  ;;  %s894_s15 = smov %s654_s16 }
  0xea   : > { %s895_s16 = smov %s897_s20  ;;  %18 = sbr.rel (!%p16_p6) target bundleno = 6 (0x6), region = 77 }
  0xf1   :  { %384 = vsyncpa [#allocation3], 1 }
  0xf2   :  { %386 = vsyncpa [#allocation3 + $0x1], 1 }
  0xf3   :  { %387 = vsyncpa [#allocation4], 1 }
  0xf4   :  { %389 = vsyncpa [#allocation4 + $0x1], 1 }

</bundles_post_ra>
